<compile_context>
chip_gen: v5e
topology: v5e:2x2
jax: 0.10.0
libtpu: 0.0.40
codegen_flags: <defaults>
</compile_context>

<pallas_src>
import functools

import jax
import jax.numpy as jnp
from jax.experimental import pallas as pl
from jax.experimental.pallas import tpu as pltpu

LANE = 128


def _round_up(x, m):
    return ((x + m - 1) // m) * m


def _pick_tile_m(m_rows, target=512):
    """Largest multiple-of-8 row tile <= target that divides M (or M itself)."""
    if m_rows <= target:
        return m_rows
    start = (target // 8) * 8
    for t in range(start, 7, -8):
        if m_rows % t == 0:
            return t
    # TODO(synk): ragged M (no multiple-of-8 divisor) -> mask the tail tile.
    return m_rows


def _vmem_cap_bytes():
    """Physical VMEM per TensorCore for this generation (conservative 64 MiB fallback)."""
    try:
        cap = getattr(pltpu.get_tpu_info(), "vmem_capacity_bytes", None)
        if cap:
            return int(cap)
    except Exception:
        pass
    return 64 * 1024 * 1024


def pick_matmul_dtype():
    """bf16 matmul operands / activation storage on v6e & v7x; f32 elsewhere (v5e has no bf16 VPU)."""
    try:
        kind = jax.devices()[0].device_kind.lower()
    except Exception:
        return jnp.float32
    if any(tag in kind for tag in ("v6", "v7", "7x")):
        return jnp.bfloat16
    return jnp.float32


# ----------------------------------------------------------------------------
# Kernels
# ----------------------------------------------------------------------------

def _first_layer_kernel(x_ref, w_ref, h_ref, s_ref, ss_ref):
    """Layer 0: h = x @ W; accumulate per-channel sum / sum-of-squares over row tiles."""
    @pl.when(pl.program_id(0) == 0)
    def _():
        s_ref[...] = jnp.zeros_like(s_ref)
        ss_ref[...] = jnp.zeros_like(ss_ref)

    h = jnp.dot(x_ref[...].astype(w_ref.dtype), w_ref[...],
                preferred_element_type=jnp.float32)            # (tm, Cout_p) f32
    h_ref[...] = h.astype(h_ref.dtype)
    # BN batch stats accumulated from the f32 matmul output; the (tm, C) h*h
    # temporary is capped at tile size (never a full (M, C) array).
    s_ref[...] += jnp.sum(h, axis=0, keepdims=True)
    ss_ref[...] += jnp.sum(h * h, axis=0, keepdims=True)


def _mid_layer_kernel(h_in_ref, scale_ref, shift_ref, w_ref, h_ref, s_ref, ss_ref):
    """Fused: normalize+ReLU of the previous layer, then this layer's conv matmul + stats."""
    @pl.when(pl.program_id(0) == 0)
    def _():
        s_ref[...] = jnp.zeros_like(s_ref)
        ss_ref[...] = jnp.zeros_like(ss_ref)

    a = jnp.maximum(h_in_ref[...].astype(jnp.float32) * scale_ref[...]
                    + shift_ref[...], 0.0)                     # BN + ReLU, f32 VPU
    h = jnp.dot(a.astype(w_ref.dtype), w_ref[...],
                preferred_element_type=jnp.float32)
    h_ref[...] = h.astype(h_ref.dtype)
    s_ref[...] += jnp.sum(h, axis=0, keepdims=True)
    ss_ref[...] += jnp.sum(h * h, axis=0, keepdims=True)


def _final_max_kernel(h_in_ref, scale_ref, shift_ref, out_ref):
    """Normalize+ReLU the last layer and max-reduce over the length axis of one batch."""
    n = pl.program_id(0)
    a = jnp.maximum(h_in_ref[...].astype(jnp.float32) * scale_ref[...]
                    + shift_ref[...], 0.0)                     # (L, C_p)
    out_ref[pl.ds(n, 1), :] = jnp.max(a, axis=0, keepdims=True)


# ----------------------------------------------------------------------------
# Wrapper
# ----------------------------------------------------------------------------

def prep_encoder_params(params, matmul_dtype=jnp.float32):
    """One-time parameter prep (hoisted out of the forward pass).

    Conv weights are transposed to (C_in, C_out) and zero-padded to 128-lane
    channel dims (the first layer's K dim stays unpadded to match the unpadded
    input).  The conv bias is dropped: it is exactly cancelled by training-mode
    BatchNorm mean subtraction.  gamma/beta are zero-padded so padded channels
    stay identically zero through the whole stack.
    """
    layers = []
    for idx, (w, _b, g, be) in enumerate(params):
        c_out, c_in = w.shape
        cout_p = _round_up(c_out, LANE)
        k = c_in if idx == 0 else _round_up(c_in, LANE)
        w_t = (jnp.zeros((k, cout_p), jnp.float32)
               .at[:c_in, :c_out].set(jnp.transpose(w.astype(jnp.float32)))
               .astype(matmul_dtype))
        g_p = jnp.zeros((1, cout_p), jnp.float32).at[0, :c_out].set(g.astype(jnp.float32))
        be_p = jnp.zeros((1, cout_p), jnp.float32).at[0, :c_out].set(be.astype(jnp.float32))
        layers.append((w_t, g_p, be_p))
    latent_dim = params[-1][0].shape[0]
    return layers, latent_dim


def _bn_scale_shift(s, ss, gamma, beta, m_rows, eps):
    """Fold training-mode BN into one per-channel scale/shift (tiny (1, C) glue)."""
    mean = s / m_rows
    var = jnp.maximum(ss / m_rows - mean * mean, 0.0)          # guard tiny negatives
    scale = gamma * jax.lax.rsqrt(var + eps)
    shift = beta - mean * scale
    return scale, shift


@functools.partial(jax.jit, static_argnames=("latent_dim", "eps", "tile_m_target"))
def encoder_forward(x_ncl, layers, latent_dim, eps=1e-5, tile_m_target=512):
    """x_ncl: (N, C_in, L) f32.  layers: output of prep_encoder_params."""
    N, C_in, L = x_ncl.shape
    M = N * L
    act_dtype = layers[0][0].dtype                 # bf16 on v6e/v7x, f32 elsewhere
    act_isz = jnp.dtype(act_dtype).itemsize
    latent_p = layers[-1][0].shape[1]

    # NCL -> channels-last (M, C_in); NOT lane-padded (no 32x-inflated HBM copy).
    x_flat = jnp.transpose(x_ncl, (0, 2, 1)).reshape(M, C_in).astype(jnp.float32)

    tile_m = _pick_tile_m(M, tile_m_target)
    n_tiles = M // tile_m

    # Per-generation VMEM budget: don't clamp 128 MiB parts down to 64 MiB.
    cap = _vmem_cap_bytes()
    max_c = max(w.shape[1] for w, _, _ in layers)
    per_step = (4 * tile_m * max_c * act_isz      # double-buffered in/out row tiles
                + 2 * max_c * max_c * act_isz     # weight
                + 8 * tile_m * max_c)             # f32 compute temporaries (h, h*h)
    vmem_limit = int(min(cap - (4 << 20), max(32 << 20, 2 * per_step)))

    def layer_call(kernel, operands, in_specs, k_dim, cout_p):
        flops = 2 * M * k_dim * cout_p + 8 * M * cout_p
        byts = ((M * k_dim + M * cout_p + k_dim * cout_p) * act_isz + 16 * cout_p)
        return pl.pallas_call(
            kernel,
            out_shape=(jax.ShapeDtypeStruct((M, cout_p), act_dtype),
                       jax.ShapeDtypeStruct((1, cout_p), jnp.float32),
                       jax.ShapeDtypeStruct((1, cout_p), jnp.float32)),
            grid=(n_tiles,),
            in_specs=in_specs,
            out_specs=(pl.BlockSpec((tile_m, cout_p), lambda t: (t, 0)),
                       pl.BlockSpec((1, cout_p), lambda t: (0, 0)),
                       pl.BlockSpec((1, cout_p), lambda t: (0, 0))),
            compiler_params=pltpu.CompilerParams(
                # stats accumulate into resident output blocks across row
                # tiles, so this axis must stay "arbitrary".
                # TODO(synk): v7x megacore -> per-core partial sums + combine.
                dimension_semantics=("arbitrary",),
                vmem_limit_bytes=vmem_limit),
            cost_estimate=pl.CostEstimate(flops=int(flops), transcendentals=0,
                                          bytes_accessed=int(byts)),
        )(*operands)

    # layer 0: conv matmul + stats
    w0, g0, b0 = layers[0]
    h, s, ss = layer_call(
        _first_layer_kernel, (x_flat, w0),
        [pl.BlockSpec((tile_m, C_in), lambda t: (t, 0)),
         pl.BlockSpec(w0.shape, lambda t: (0, 0))],
        C_in, w0.shape[1])
    scale, shift = _bn_scale_shift(s, ss, g0, b0, M, eps)

    # layers 1..n-1: fused (normalize+ReLU of previous layer) -> conv matmul -> stats
    for (w, g, b) in layers[1:]:
        cin_p, cout_p = w.shape
        h, s, ss = layer_call(
            _mid_layer_kernel, (h, scale, shift, w),
            [pl.BlockSpec((tile_m, cin_p), lambda t: (t, 0)),
             pl.BlockSpec((1, cin_p), lambda t: (0, 0)),
             pl.BlockSpec((1, cin_p), lambda t: (0, 0)),
             pl.BlockSpec(w.shape, lambda t: (0, 0))],
            cin_p, cout_p)
        scale, shift = _bn_scale_shift(s, ss, g, b, M, eps)

    # final: normalize+ReLU the last layer and max over the length axis.
    # One dense (L, C) reduction per batch, single lane-dense output store.
    assert N == 1 or L % 8 == 0, (
        "L must be a multiple of 8 for the per-batch max block")  # TODO(synk): mask ragged L
    out_pad = pl.pallas_call(
        _final_max_kernel,
        out_shape=jax.ShapeDtypeStruct((N, latent_p), jnp.float32),
        grid=(N,),
        in_specs=[pl.BlockSpec((L, latent_p), lambda n: (n, 0)),
                  pl.BlockSpec((1, latent_p), lambda n: (0, 0)),
                  pl.BlockSpec((1, latent_p), lambda n: (0, 0))],
        out_specs=pl.BlockSpec((N, latent_p), lambda n: (0, 0)),
        compiler_params=pltpu.CompilerParams(
            dimension_semantics=("arbitrary",),
            vmem_limit_bytes=vmem_limit),
    )(h, scale, shift)

    return out_pad[:, :latent_dim]


# ----------------------------------------------------------------------------
# Reference + test harness
# ----------------------------------------------------------------------------

def encoder_reference(x_ncl, params, eps=1e-5):
    """Pure-JAX reference mirroring the PyTorch forward (training-mode BN, ReLU).

    Keeps the conv bias, proving the kernel's bias-drop is exact."""
    N, C_in, L = x_ncl.shape
    h = jnp.transpose(x_ncl, (0, 2, 1)).reshape(N * L, C_in)
    for (w, b, g, be) in params:
        h = h @ w.T + b
        m = jnp.mean(h, axis=0)
        v = jnp.mean((h - m) ** 2, axis=0)
        h = (h - m) / jnp.sqrt(v + eps) * g + be
        h = jnp.maximum(h, 0.0)
    latent = params[-1][0].shape[0]
    return jnp.max(h.reshape(N, L, latent), axis=1)


def init_params(key, input_dim, filters):
    """Deterministic parameter init (Conv1d: uniform like PyTorch; BN: gamma=1, beta=0)."""
    params = []
    c_in = input_dim
    for c_out in filters:
        key, kw, kb = jax.random.split(key, 3)
        bound = 1.0 / jnp.sqrt(c_in)
        w = jax.random.uniform(kw, (c_out, c_in), jnp.float32, -bound, bound)
        b = jax.random.uniform(kb, (c_out,), jnp.float32, -bound, bound)
        params.append((w, b, jnp.ones((c_out,), jnp.float32),
                       jnp.zeros((c_out,), jnp.float32)))
        c_in = c_out
    return params


if __name__ == "__main__":
    # small shapes consistent with the module: batch=2, input_dim=4, length=16
    N, INPUT_DIM, L = 2, 4, 16
    FILTERS = [8, 16, 32]          # latent_dim = 32

    key = jax.random.PRNGKey(0)
    kx, kp = jax.random.split(key)
    x = jax.random.normal(kx, (N, INPUT_DIM, L), jnp.float32)
    params = init_params(kp, INPUT_DIM, FILTERS)
    ref = encoder_reference(x, params)

    # exact-precision path (f32 matmul operands): tight check on every generation
    layers_f32, latent = prep_encoder_params(params, jnp.float32)
    out = jax.block_until_ready(encoder_forward(x, layers_f32, latent_dim=latent))
    assert out.shape == (N, FILTERS[-1]), out.shape
    assert jnp.allclose(out, ref, atol=1e-4, rtol=1e-4), "f32 mismatch vs reference"

    # generation-tuned path: bf16 matmul operands / bf16 activation storage on v6e/v7x
    fast_dtype = pick_matmul_dtype()
    if fast_dtype != jnp.float32:
        layers_fast, latent = prep_encoder_params(params, fast_dtype)
        out_fast = jax.block_until_ready(
            encoder_forward(x, layers_fast, latent_dim=latent))
        assert jnp.allclose(out_fast, ref, atol=5e-2, rtol=5e-2), \
            "bf16 mismatch vs reference"

    print("KERNEL_OK")
</pallas_src>

<mosaic_0001>
module attributes {stable_mosaic.version = 11 : i64} {
  func.func @_mid_layer_kernel(%arg0: i32, %arg1: memref<32x128xf32, #tpu.memory_space<vmem>>, %arg2: memref<1x128xf32, #tpu.memory_space<vmem>>, %arg3: memref<1x128xf32, #tpu.memory_space<vmem>>, %arg4: memref<128x128xf32, #tpu.memory_space<vmem>>, %arg5: memref<32x128xf32, #tpu.memory_space<vmem>>, %arg6: memref<1x128xf32, #tpu.memory_space<vmem>>, %arg7: memref<1x128xf32, #tpu.memory_space<vmem>>) attributes {dimension_semantics = [#tpu.dimension_semantics<arbitrary>], iteration_bounds = array<i64: 1>, scalar_prefetch = 0 : i64, scratch_operands = 0 : i64, tpu.core_type = #tpu.core_type<tc>, window_params = [{transform_indices = @transform_0, window_bounds = array<i64: 32, 128>}, {pipeline_mode = #tpu.pipeline_mode<synchronous>, transform_indices = @transform_1, window_bounds = array<i64: 1, 128>}, {pipeline_mode = #tpu.pipeline_mode<synchronous>, transform_indices = @transform_2, window_bounds = array<i64: 1, 128>}, {pipeline_mode = #tpu.pipeline_mode<synchronous>, transform_indices = @transform_3, window_bounds = array<i64: 128, 128>}, {transform_indices = @transform_4, window_bounds = array<i64: 32, 128>}, {pipeline_mode = #tpu.pipeline_mode<synchronous>, transform_indices = @transform_5, window_bounds = array<i64: 1, 128>}, {pipeline_mode = #tpu.pipeline_mode<synchronous>, transform_indices = @transform_6, window_bounds = array<i64: 1, 128>}]} {
    %c0_i32 = arith.constant 0 : i32
    %0 = arith.cmpi eq, %arg0, %c0_i32 : i32
    %1 = arith.extui %0 : i1 to i32
    %c0_i32_0 = arith.constant 0 : i32
    %2 = arith.cmpi ne, %1, %c0_i32_0 : i32
    scf.if %2 {
      %cst_21 = arith.constant 0.000000e+00 : f32
      %26 = vector.broadcast %cst_21 : f32 to vector<1x128xf32>
      %c0_22 = arith.constant 0 : index
      %c0_23 = arith.constant 0 : index
      %27 = vector.load %arg6[%c0_22, %c0_23] : memref<1x128xf32, #tpu.memory_space<vmem>>, vector<1x128xf32>
      tpu.vector_store %arg6[%c0_22, %c0_23], %26 {strides = array<i32>} : memref<1x128xf32, #tpu.memory_space<vmem>>, vector<1x128xf32>,
      %cst_24 = arith.constant 0.000000e+00 : f32
      %28 = vector.broadcast %cst_24 : f32 to vector<1x128xf32>
      %c0_25 = arith.constant 0 : index
      %c0_26 = arith.constant 0 : index
      %29 = vector.load %arg7[%c0_25, %c0_26] : memref<1x128xf32, #tpu.memory_space<vmem>>, vector<1x128xf32>
      tpu.vector_store %arg7[%c0_25, %c0_26], %28 {strides = array<i32>} : memref<1x128xf32, #tpu.memory_space<vmem>>, vector<1x128xf32>,
    } else {
    }
    %c0 = arith.constant 0 : index
    %c0_1 = arith.constant 0 : index
    %3 = vector.load %arg1[%c0, %c0_1] : memref<32x128xf32, #tpu.memory_space<vmem>>, vector<32x128xf32>
    %c0_2 = arith.constant 0 : index
    %c0_3 = arith.constant 0 : index
    %4 = vector.load %arg2[%c0_2, %c0_3] : memref<1x128xf32, #tpu.memory_space<vmem>>, vector<1x128xf32>
    %5 = vector.broadcast %4 : vector<1x128xf32> to vector<32x128xf32>
    %6 = arith.mulf %3, %5 : vector<32x128xf32>
    %c0_4 = arith.constant 0 : index
    %c0_5 = arith.constant 0 : index
    %7 = vector.load %arg3[%c0_4, %c0_5] : memref<1x128xf32, #tpu.memory_space<vmem>>, vector<1x128xf32>
    %8 = vector.broadcast %7 : vector<1x128xf32> to vector<32x128xf32>
    %9 = arith.addf %6, %8 : vector<32x128xf32>
    %cst = arith.constant 0.000000e+00 : f32
    %10 = vector.broadcast %cst : f32 to vector<32x128xf32>
    %11 = arith.maximumf %9, %10 : vector<32x128xf32>
    %c0_6 = arith.constant 0 : index
    %c0_7 = arith.constant 0 : index
    %12 = vector.load %arg4[%c0_6, %c0_7] : memref<128x128xf32, #tpu.memory_space<vmem>>, vector<128x128xf32>
    %cst_8 = arith.constant dense<0.000000e+00> : vector<32x128xf32>
    %13 = tpu.matmul %11, %12, %cst_8 {dimension_numbers = #tpu.dot_dimension_numbers<[1], [0], [0], [1], [0, 0, 1, 1], [], []>} : vector<32x128xf32>, vector<128x128xf32>, vector<32x128xf32> -> vector<32x128xf32>
    %c0_9 = arith.constant 0 : index
    %c0_10 = arith.constant 0 : index
    %14 = vector.load %arg5[%c0_9, %c0_10] : memref<32x128xf32, #tpu.memory_space<vmem>>, vector<32x128xf32>
    tpu.vector_store %arg5[%c0_9, %c0_10], %13 {strides = array<i32>} : memref<32x128xf32, #tpu.memory_space<vmem>>, vector<32x128xf32>,
    %c0_11 = arith.constant 0 : index
    %c0_12 = arith.constant 0 : index
    %15 = vector.load %arg6[%c0_11, %c0_12] : memref<1x128xf32, #tpu.memory_space<vmem>>, vector<1x128xf32>
    %cst_13 = arith.constant dense<0.000000e+00> : vector<128xf32>
    %16 = vector.multi_reduction <add>, %13, %cst_13 [0] : vector<32x128xf32> to vector<128xf32>
    %17 = vector.shape_cast %16 : vector<128xf32> to vector<1x128xf32>
    %18 = arith.addf %15, %17 : vector<1x128xf32>
    %c0_14 = arith.constant 0 : index
    %c0_15 = arith.constant 0 : index
    %19 = vector.load %arg6[%c0_14, %c0_15] : memref<1x128xf32, #tpu.memory_space<vmem>>, vector<1x128xf32>
    tpu.vector_store %arg6[%c0_14, %c0_15], %18 {strides = array<i32>} : memref<1x128xf32, #tpu.memory_space<vmem>>, vector<1x128xf32>,
    %c0_16 = arith.constant 0 : index
    %c0_17 = arith.constant 0 : index
    %20 = vector.load %arg7[%c0_16, %c0_17] : memref<1x128xf32, #tpu.memory_space<vmem>>, vector<1x128xf32>
    %21 = arith.mulf %13, %13 : vector<32x128xf32>
    %cst_18 = arith.constant dense<0.000000e+00> : vector<128xf32>
    %22 = vector.multi_reduction <add>, %21, %cst_18 [0] : vector<32x128xf32> to vector<128xf32>
    %23 = vector.shape_cast %22 : vector<128xf32> to vector<1x128xf32>
    %24 = arith.addf %20, %23 : vector<1x128xf32>
    %c0_19 = arith.constant 0 : index
    %c0_20 = arith.constant 0 : index
    %25 = vector.load %arg7[%c0_19, %c0_20] : memref<1x128xf32, #tpu.memory_space<vmem>>, vector<1x128xf32>
    tpu.vector_store %arg7[%c0_19, %c0_20], %24 {strides = array<i32>} : memref<1x128xf32, #tpu.memory_space<vmem>>, vector<1x128xf32>,
    return
  }
  func.func @transform_0(%arg0: i32) -> (i32, i32) {
    %c0_i32 = arith.constant 0 : i32
    %c0_i32_0 = arith.constant 0 : i32
    return %arg0, %c0_i32 : i32, i32
  }
  func.func @transform_1(%arg0: i32) -> (i32, i32) {
    %c0_i32 = arith.constant 0 : i32
    %c0_i32_0 = arith.constant 0 : i32
    %c0_i32_1 = arith.constant 0 : i32
    return %c0_i32, %c0_i32_0 : i32, i32
  }
  func.func @transform_2(%arg0: i32) -> (i32, i32) {
    %c0_i32 = arith.constant 0 : i32
    %c0_i32_0 = arith.constant 0 : i32
    %c0_i32_1 = arith.constant 0 : i32
    return %c0_i32, %c0_i32_0 : i32, i32
  }
  func.func @transform_3(%arg0: i32) -> (i32, i32) {
    %c0_i32 = arith.constant 0 : i32
    %c0_i32_0 = arith.constant 0 : i32
    %c0_i32_1 = arith.constant 0 : i32
    return %c0_i32, %c0_i32_0 : i32, i32
  }
  func.func @transform_4(%arg0: i32) -> (i32, i32) {
    %c0_i32 = arith.constant 0 : i32
    %c0_i32_0 = arith.constant 0 : i32
    return %arg0, %c0_i32 : i32, i32
  }
  func.func @transform_5(%arg0: i32) -> (i32, i32) {
    %c0_i32 = arith.constant 0 : i32
    %c0_i32_0 = arith.constant 0 : i32
    %c0_i32_1 = arith.constant 0 : i32
    return %c0_i32, %c0_i32_0 : i32, i32
  }
  func.func @transform_6(%arg0: i32) -> (i32, i32) {
    %c0_i32 = arith.constant 0 : i32
    %c0_i32_0 = arith.constant 0 : i32
    %c0_i32_1 = arith.constant 0 : i32
    return %c0_i32, %c0_i32_0 : i32, i32
  }
}

module attributes {stable_mosaic.version = 11 : i64} {
  func.func @_first_layer_kernel(%arg0: i32, %arg1: memref<32x4xf32, #tpu.memory_space<vmem>>, %arg2: memref<4x128xf32, #tpu.memory_space<vmem>>, %arg3: memref<32x128xf32, #tpu.memory_space<vmem>>, %arg4: memref<1x128xf32, #tpu.memory_space<vmem>>, %arg5: memref<1x128xf32, #tpu.memory_space<vmem>>) attributes {dimension_semantics = [#tpu.dimension_semantics<arbitrary>], iteration_bounds = array<i64: 1>, scalar_prefetch = 0 : i64, scratch_operands = 0 : i64, tpu.core_type = #tpu.core_type<tc>, window_params = [{transform_indices = @transform_0, window_bounds = array<i64: 32, 4>}, {pipeline_mode = #tpu.pipeline_mode<synchronous>, transform_indices = @transform_1, window_bounds = array<i64: 4, 128>}, {transform_indices = @transform_2, window_bounds = array<i64: 32, 128>}, {pipeline_mode = #tpu.pipeline_mode<synchronous>, transform_indices = @transform_3, window_bounds = array<i64: 1, 128>}, {pipeline_mode = #tpu.pipeline_mode<synchronous>, transform_indices = @transform_4, window_bounds = array<i64: 1, 128>}]} {
    %c0_i32 = arith.constant 0 : i32
    %0 = arith.cmpi eq, %arg0, %c0_i32 : i32
    %1 = arith.extui %0 : i1 to i32
    %c0_i32_0 = arith.constant 0 : i32
    %2 = arith.cmpi ne, %1, %c0_i32_0 : i32
    scf.if %2 {
      %cst_16 = arith.constant 0.000000e+00 : f32
      %18 = vector.broadcast %cst_16 : f32 to vector<1x128xf32>
      %c0_17 = arith.constant 0 : index
      %c0_18 = arith.constant 0 : index
      %19 = vector.load %arg4[%c0_17, %c0_18] : memref<1x128xf32, #tpu.memory_space<vmem>>, vector<1x128xf32>
      tpu.vector_store %arg4[%c0_17, %c0_18], %18 {strides = array<i32>} : memref<1x128xf32, #tpu.memory_space<vmem>>, vector<1x128xf32>,
      %cst_19 = arith.constant 0.000000e+00 : f32
      %20 = vector.broadcast %cst_19 : f32 to vector<1x128xf32>
      %c0_20 = arith.constant 0 : index
      %c0_21 = arith.constant 0 : index
      %21 = vector.load %arg5[%c0_20, %c0_21] : memref<1x128xf32, #tpu.memory_space<vmem>>, vector<1x128xf32>
      tpu.vector_store %arg5[%c0_20, %c0_21], %20 {strides = array<i32>} : memref<1x128xf32, #tpu.memory_space<vmem>>, vector<1x128xf32>,
    } else {
    }
    %c0 = arith.constant 0 : index
    %c0_1 = arith.constant 0 : index
    %3 = vector.load %arg1[%c0, %c0_1] : memref<32x4xf32, #tpu.memory_space<vmem>>, vector<32x4xf32>
    %c0_2 = arith.constant 0 : index
    %c0_3 = arith.constant 0 : index
    %4 = vector.load %arg2[%c0_2, %c0_3] : memref<4x128xf32, #tpu.memory_space<vmem>>, vector<4x128xf32>
    %cst = arith.constant dense<0.000000e+00> : vector<32x128xf32>
    %5 = tpu.matmul %3, %4, %cst {dimension_numbers = #tpu.dot_dimension_numbers<[1], [0], [0], [1], [0, 0, 1, 1], [], []>} : vector<32x4xf32>, vector<4x128xf32>, vector<32x128xf32> -> vector<32x128xf32>
    %c0_4 = arith.constant 0 : index
    %c0_5 = arith.constant 0 : index
    %6 = vector.load %arg3[%c0_4, %c0_5] : memref<32x128xf32, #tpu.memory_space<vmem>>, vector<32x128xf32>
    tpu.vector_store %arg3[%c0_4, %c0_5], %5 {strides = array<i32>} : memref<32x128xf32, #tpu.memory_space<vmem>>, vector<32x128xf32>,
    %c0_6 = arith.constant 0 : index
    %c0_7 = arith.constant 0 : index
    %7 = vector.load %arg4[%c0_6, %c0_7] : memref<1x128xf32, #tpu.memory_space<vmem>>, vector<1x128xf32>
    %cst_8 = arith.constant dense<0.000000e+00> : vector<128xf32>
    %8 = vector.multi_reduction <add>, %5, %cst_8 [0] : vector<32x128xf32> to vector<128xf32>
    %9 = vector.shape_cast %8 : vector<128xf32> to vector<1x128xf32>
    %10 = arith.addf %7, %9 : vector<1x128xf32>
    %c0_9 = arith.constant 0 : index
    %c0_10 = arith.constant 0 : index
    %11 = vector.load %arg4[%c0_9, %c0_10] : memref<1x128xf32, #tpu.memory_space<vmem>>, vector<1x128xf32>
    tpu.vector_store %arg4[%c0_9, %c0_10], %10 {strides = array<i32>} : memref<1x128xf32, #tpu.memory_space<vmem>>, vector<1x128xf32>,
    %c0_11 = arith.constant 0 : index
    %c0_12 = arith.constant 0 : index
    %12 = vector.load %arg5[%c0_11, %c0_12] : memref<1x128xf32, #tpu.memory_space<vmem>>, vector<1x128xf32>
    %13 = arith.mulf %5, %5 : vector<32x128xf32>
    %cst_13 = arith.constant dense<0.000000e+00> : vector<128xf32>
    %14 = vector.multi_reduction <add>, %13, %cst_13 [0] : vector<32x128xf32> to vector<128xf32>
    %15 = vector.shape_cast %14 : vector<128xf32> to vector<1x128xf32>
    %16 = arith.addf %12, %15 : vector<1x128xf32>
    %c0_14 = arith.constant 0 : index
    %c0_15 = arith.constant 0 : index
    %17 = vector.load %arg5[%c0_14, %c0_15] : memref<1x128xf32, #tpu.memory_space<vmem>>, vector<1x128xf32>
    tpu.vector_store %arg5[%c0_14, %c0_15], %16 {strides = array<i32>} : memref<1x128xf32, #tpu.memory_space<vmem>>, vector<1x128xf32>,
    return
  }
  func.func @transform_0(%arg0: i32) -> (i32, i32) {
    %c0_i32 = arith.constant 0 : i32
    %c0_i32_0 = arith.constant 0 : i32
    return %arg0, %c0_i32 : i32, i32
  }
  func.func @transform_1(%arg0: i32) -> (i32, i32) {
    %c0_i32 = arith.constant 0 : i32
    %c0_i32_0 = arith.constant 0 : i32
    %c0_i32_1 = arith.constant 0 : i32
    return %c0_i32, %c0_i32_0 : i32, i32
  }
  func.func @transform_2(%arg0: i32) -> (i32, i32) {
    %c0_i32 = arith.constant 0 : i32
    %c0_i32_0 = arith.constant 0 : i32
    return %arg0, %c0_i32 : i32, i32
  }
  func.func @transform_3(%arg0: i32) -> (i32, i32) {
    %c0_i32 = arith.constant 0 : i32
    %c0_i32_0 = arith.constant 0 : i32
    %c0_i32_1 = arith.constant 0 : i32
    return %c0_i32, %c0_i32_0 : i32, i32
  }
  func.func @transform_4(%arg0: i32) -> (i32, i32) {
    %c0_i32 = arith.constant 0 : i32
    %c0_i32_0 = arith.constant 0 : i32
    %c0_i32_1 = arith.constant 0 : i32
    return %c0_i32, %c0_i32_0 : i32, i32
  }
}

module attributes {stable_mosaic.version = 11 : i64} {
  func.func @_final_max_kernel(%arg0: i32, %arg1: memref<16x128xf32, #tpu.memory_space<vmem>>, %arg2: memref<1x128xf32, #tpu.memory_space<vmem>>, %arg3: memref<1x128xf32, #tpu.memory_space<vmem>>, %arg4: memref<2x128xf32, #tpu.memory_space<vmem>>) attributes {dimension_semantics = [#tpu.dimension_semantics<arbitrary>], iteration_bounds = array<i64: 2>, scalar_prefetch = 0 : i64, scratch_operands = 0 : i64, tpu.core_type = #tpu.core_type<tc>, window_params = [{transform_indices = @transform_0, window_bounds = array<i64: 16, 128>}, {pipeline_mode = #tpu.pipeline_mode<synchronous>, transform_indices = @transform_1, window_bounds = array<i64: 1, 128>}, {pipeline_mode = #tpu.pipeline_mode<synchronous>, transform_indices = @transform_2, window_bounds = array<i64: 1, 128>}, {pipeline_mode = #tpu.pipeline_mode<synchronous>, transform_indices = @transform_3, window_bounds = array<i64: 2, 128>}]} {
    %c0 = arith.constant 0 : index
    %c0_0 = arith.constant 0 : index
    %0 = vector.load %arg1[%c0, %c0_0] : memref<16x128xf32, #tpu.memory_space<vmem>>, vector<16x128xf32>
    %c0_1 = arith.constant 0 : index
    %c0_2 = arith.constant 0 : index
    %1 = vector.load %arg2[%c0_1, %c0_2] : memref<1x128xf32, #tpu.memory_space<vmem>>, vector<1x128xf32>
    %2 = vector.broadcast %1 : vector<1x128xf32> to vector<16x128xf32>
    %3 = arith.mulf %0, %2 : vector<16x128xf32>
    %c0_3 = arith.constant 0 : index
    %c0_4 = arith.constant 0 : index
    %4 = vector.load %arg3[%c0_3, %c0_4] : memref<1x128xf32, #tpu.memory_space<vmem>>, vector<1x128xf32>
    %5 = vector.broadcast %4 : vector<1x128xf32> to vector<16x128xf32>
    %6 = arith.addf %3, %5 : vector<16x128xf32>
    %cst = arith.constant 0.000000e+00 : f32
    %7 = vector.broadcast %cst : f32 to vector<16x128xf32>
    %8 = arith.maximumf %6, %7 : vector<16x128xf32>
    %cst_5 = arith.constant dense<0xFF800000> : vector<128xf32>
    %9 = vector.multi_reduction <maximumf>, %8, %cst_5 [0] : vector<16x128xf32> to vector<128xf32>
    %10 = vector.shape_cast %9 : vector<128xf32> to vector<1x128xf32>
    %11 = arith.index_cast %arg0 : i32 to index
    %c0_6 = arith.constant 0 : index
    %12 = vector.load %arg4[%11, %c0_6] : memref<2x128xf32, #tpu.memory_space<vmem>>, vector<1x128xf32>
    tpu.vector_store %arg4[%11, %c0_6], %10 {strides = array<i32>} : memref<2x128xf32, #tpu.memory_space<vmem>>, vector<1x128xf32>,
    return
  }
  func.func @transform_0(%arg0: i32) -> (i32, i32) {
    %c0_i32 = arith.constant 0 : i32
    %c0_i32_0 = arith.constant 0 : i32
    return %arg0, %c0_i32 : i32, i32
  }
  func.func @transform_1(%arg0: i32) -> (i32, i32) {
    %c0_i32 = arith.constant 0 : i32
    %c0_i32_0 = arith.constant 0 : i32
    %c0_i32_1 = arith.constant 0 : i32
    return %c0_i32, %c0_i32_0 : i32, i32
  }
  func.func @transform_2(%arg0: i32) -> (i32, i32) {
    %c0_i32 = arith.constant 0 : i32
    %c0_i32_0 = arith.constant 0 : i32
    %c0_i32_1 = arith.constant 0 : i32
    return %c0_i32, %c0_i32_0 : i32, i32
  }
  func.func @transform_3(%arg0: i32) -> (i32, i32) {
    %c0_i32 = arith.constant 0 : i32
    %c0_i32_0 = arith.constant 0 : i32
    %c0_i32_1 = arith.constant 0 : i32
    return %c0_i32, %c0_i32_0 : i32, i32
  }
}

module attributes {stable_mosaic.version = 11 : i64} {
  func.func @_mid_layer_kernel(%arg0: i32, %arg1: memref<32x128xf32, #tpu.memory_space<vmem>>, %arg2: memref<1x128xf32, #tpu.memory_space<vmem>>, %arg3: memref<1x128xf32, #tpu.memory_space<vmem>>, %arg4: memref<128x128xf32, #tpu.memory_space<vmem>>, %arg5: memref<32x128xf32, #tpu.memory_space<vmem>>, %arg6: memref<1x128xf32, #tpu.memory_space<vmem>>, %arg7: memref<1x128xf32, #tpu.memory_space<vmem>>) attributes {dimension_semantics = [#tpu.dimension_semantics<arbitrary>], iteration_bounds = array<i64: 1>, scalar_prefetch = 0 : i64, scratch_operands = 0 : i64, tpu.core_type = #tpu.core_type<tc>, window_params = [{transform_indices = @transform_0, window_bounds = array<i64: 32, 128>}, {pipeline_mode = #tpu.pipeline_mode<synchronous>, transform_indices = @transform_1, window_bounds = array<i64: 1, 128>}, {pipeline_mode = #tpu.pipeline_mode<synchronous>, transform_indices = @transform_2, window_bounds = array<i64: 1, 128>}, {pipeline_mode = #tpu.pipeline_mode<synchronous>, transform_indices = @transform_3, window_bounds = array<i64: 128, 128>}, {transform_indices = @transform_4, window_bounds = array<i64: 32, 128>}, {pipeline_mode = #tpu.pipeline_mode<synchronous>, transform_indices = @transform_5, window_bounds = array<i64: 1, 128>}, {pipeline_mode = #tpu.pipeline_mode<synchronous>, transform_indices = @transform_6, window_bounds = array<i64: 1, 128>}]} {
    %c0_i32 = arith.constant 0 : i32
    %0 = arith.cmpi eq, %arg0, %c0_i32 : i32
    %1 = arith.extui %0 : i1 to i32
    %c0_i32_0 = arith.constant 0 : i32
    %2 = arith.cmpi ne, %1, %c0_i32_0 : i32
    scf.if %2 {
      %cst_21 = arith.constant 0.000000e+00 : f32
      %26 = vector.broadcast %cst_21 : f32 to vector<1x128xf32>
      %c0_22 = arith.constant 0 : index
      %c0_23 = arith.constant 0 : index
      %27 = vector.load %arg6[%c0_22, %c0_23] : memref<1x128xf32, #tpu.memory_space<vmem>>, vector<1x128xf32>
      tpu.vector_store %arg6[%c0_22, %c0_23], %26 {strides = array<i32>} : memref<1x128xf32, #tpu.memory_space<vmem>>, vector<1x128xf32>,
      %cst_24 = arith.constant 0.000000e+00 : f32
      %28 = vector.broadcast %cst_24 : f32 to vector<1x128xf32>
      %c0_25 = arith.constant 0 : index
      %c0_26 = arith.constant 0 : index
      %29 = vector.load %arg7[%c0_25, %c0_26] : memref<1x128xf32, #tpu.memory_space<vmem>>, vector<1x128xf32>
      tpu.vector_store %arg7[%c0_25, %c0_26], %28 {strides = array<i32>} : memref<1x128xf32, #tpu.memory_space<vmem>>, vector<1x128xf32>,
    } else {
    }
    %c0 = arith.constant 0 : index
    %c0_1 = arith.constant 0 : index
    %3 = vector.load %arg1[%c0, %c0_1] : memref<32x128xf32, #tpu.memory_space<vmem>>, vector<32x128xf32>
    %c0_2 = arith.constant 0 : index
    %c0_3 = arith.constant 0 : index
    %4 = vector.load %arg2[%c0_2, %c0_3] : memref<1x128xf32, #tpu.memory_space<vmem>>, vector<1x128xf32>
    %5 = vector.broadcast %4 : vector<1x128xf32> to vector<32x128xf32>
    %6 = arith.mulf %3, %5 : vector<32x128xf32>
    %c0_4 = arith.constant 0 : index
    %c0_5 = arith.constant 0 : index
    %7 = vector.load %arg3[%c0_4, %c0_5] : memref<1x128xf32, #tpu.memory_space<vmem>>, vector<1x128xf32>
    %8 = vector.broadcast %7 : vector<1x128xf32> to vector<32x128xf32>
    %9 = arith.addf %6, %8 : vector<32x128xf32>
    %cst = arith.constant 0.000000e+00 : f32
    %10 = vector.broadcast %cst : f32 to vector<32x128xf32>
    %11 = arith.maximumf %9, %10 : vector<32x128xf32>
    %c0_6 = arith.constant 0 : index
    %c0_7 = arith.constant 0 : index
    %12 = vector.load %arg4[%c0_6, %c0_7] : memref<128x128xf32, #tpu.memory_space<vmem>>, vector<128x128xf32>
    %cst_8 = arith.constant dense<0.000000e+00> : vector<32x128xf32>
    %13 = tpu.matmul %11, %12, %cst_8 {dimension_numbers = #tpu.dot_dimension_numbers<[1], [0], [0], [1], [0, 0, 1, 1], [], []>} : vector<32x128xf32>, vector<128x128xf32>, vector<32x128xf32> -> vector<32x128xf32>
    %c0_9 = arith.constant 0 : index
    %c0_10 = arith.constant 0 : index
    %14 = vector.load %arg5[%c0_9, %c0_10] : memref<32x128xf32, #tpu.memory_space<vmem>>, vector<32x128xf32>
    tpu.vector_store %arg5[%c0_9, %c0_10], %13 {strides = array<i32>} : memref<32x128xf32, #tpu.memory_space<vmem>>, vector<32x128xf32>,
    %c0_11 = arith.constant 0 : index
    %c0_12 = arith.constant 0 : index
    %15 = vector.load %arg6[%c0_11, %c0_12] : memref<1x128xf32, #tpu.memory_space<vmem>>, vector<1x128xf32>
    %cst_13 = arith.constant dense<0.000000e+00> : vector<128xf32>
    %16 = vector.multi_reduction <add>, %13, %cst_13 [0] : vector<32x128xf32> to vector<128xf32>
    %17 = vector.shape_cast %16 : vector<128xf32> to vector<1x128xf32>
    %18 = arith.addf %15, %17 : vector<1x128xf32>
    %c0_14 = arith.constant 0 : index
    %c0_15 = arith.constant 0 : index
    %19 = vector.load %arg6[%c0_14, %c0_15] : memref<1x128xf32, #tpu.memory_space<vmem>>, vector<1x128xf32>
    tpu.vector_store %arg6[%c0_14, %c0_15], %18 {strides = array<i32>} : memref<1x128xf32, #tpu.memory_space<vmem>>, vector<1x128xf32>,
    %c0_16 = arith.constant 0 : index
    %c0_17 = arith.constant 0 : index
    %20 = vector.load %arg7[%c0_16, %c0_17] : memref<1x128xf32, #tpu.memory_space<vmem>>, vector<1x128xf32>
    %21 = arith.mulf %13, %13 : vector<32x128xf32>
    %cst_18 = arith.constant dense<0.000000e+00> : vector<128xf32>
    %22 = vector.multi_reduction <add>, %21, %cst_18 [0] : vector<32x128xf32> to vector<128xf32>
    %23 = vector.shape_cast %22 : vector<128xf32> to vector<1x128xf32>
    %24 = arith.addf %20, %23 : vector<1x128xf32>
    %c0_19 = arith.constant 0 : index
    %c0_20 = arith.constant 0 : index
    %25 = vector.load %arg7[%c0_19, %c0_20] : memref<1x128xf32, #tpu.memory_space<vmem>>, vector<1x128xf32>
    tpu.vector_store %arg7[%c0_19, %c0_20], %24 {strides = array<i32>} : memref<1x128xf32, #tpu.memory_space<vmem>>, vector<1x128xf32>,
    return
  }
  func.func @transform_0(%arg0: i32) -> (i32, i32) {
    %c0_i32 = arith.constant 0 : i32
    %c0_i32_0 = arith.constant 0 : i32
    return %arg0, %c0_i32 : i32, i32
  }
  func.func @transform_1(%arg0: i32) -> (i32, i32) {
    %c0_i32 = arith.constant 0 : i32
    %c0_i32_0 = arith.constant 0 : i32
    %c0_i32_1 = arith.constant 0 : i32
    return %c0_i32, %c0_i32_0 : i32, i32
  }
  func.func @transform_2(%arg0: i32) -> (i32, i32) {
    %c0_i32 = arith.constant 0 : i32
    %c0_i32_0 = arith.constant 0 : i32
    %c0_i32_1 = arith.constant 0 : i32
    return %c0_i32, %c0_i32_0 : i32, i32
  }
  func.func @transform_3(%arg0: i32) -> (i32, i32) {
    %c0_i32 = arith.constant 0 : i32
    %c0_i32_0 = arith.constant 0 : i32
    %c0_i32_1 = arith.constant 0 : i32
    return %c0_i32, %c0_i32_0 : i32, i32
  }
  func.func @transform_4(%arg0: i32) -> (i32, i32) {
    %c0_i32 = arith.constant 0 : i32
    %c0_i32_0 = arith.constant 0 : i32
    return %arg0, %c0_i32 : i32, i32
  }
  func.func @transform_5(%arg0: i32) -> (i32, i32) {
    %c0_i32 = arith.constant 0 : i32
    %c0_i32_0 = arith.constant 0 : i32
    %c0_i32_1 = arith.constant 0 : i32
    return %c0_i32, %c0_i32_0 : i32, i32
  }
  func.func @transform_6(%arg0: i32) -> (i32, i32) {
    %c0_i32 = arith.constant 0 : i32
    %c0_i32_0 = arith.constant 0 : i32
    %c0_i32_1 = arith.constant 0 : i32
    return %c0_i32, %c0_i32_0 : i32, i32
  }
}

</mosaic_0001>

<bundles_post_ra>
// kernel: encoder_forward.6
= control target key start
LH: loop header
LB: loop body
LE: loop exit
PB: predicated region body
PF: predicated region fallthrough
CT: control target
= control target key end

     0   :  { %v190_v34 = vmov 0.0   ;;  %s322_s3 = inlined_call_operand.vmem [shape: f32[128,128], index: 3, kind: input, shape index: {}]   ;;  %s323_s1 = inlined_call_operand.vmem [shape: f32[1,128], index: 1, kind: input, shape index: {}]   ;;  %s324_s2 = inlined_call_operand.vmem [shape: f32[1,128], index: 2, kind: input, shape index: {}]   ;;  %s325_s0 = inlined_call_operand.vmem [shape: f32[32,128], index: 0, kind: input, shape index: {}]   ;;  %s326_s5 = inlined_call_operand.vmem [shape: f32[1,128], index: 5, kind: output, shape index: {1}]   ;;  %s327_s6 = inlined_call_operand.vmem [shape: f32[1,128], index: 6, kind: output, shape index: {2}]   ;;  %s328_s4 = inlined_call_operand.vmem [shape: f32[32,128], index: 4, kind: output, shape index: {0}]  }
   0x1   :  { %v65_v0 = vld [vmem:[%s322_s3 + $0x78] sm:$0xff]  ;;  %v64_v1 = vld [vmem:[%s322_s3 + $0x70] sm:$0xff]  ;;  %v63_v2 = vld [vmem:[%s322_s3 + $0x68] sm:$0xff]  ;;  %24 = vst [vmem:[%s326_s5] sm:$0x1] %v190_v34 }
   0x2   :  { %140 = vmatpush.msra.mxu2 %v65_v0  ;;  %141 = vmatpush.msra.mxu3 %v65_v0  ;;  %v62_v3 = vld [vmem:[%s322_s3 + $0x60] sm:$0xff]  ;;  %v61_v4 = vld [vmem:[%s322_s3 + $0x58] sm:$0xff]  ;;  %v60_v5 = vld [vmem:[%s322_s3 + $0x50] sm:$0xff]  ;;  %25 = vst [vmem:[%s327_s6] sm:$0x1] %v190_v34 }
   0x3   :  { %66 = vmatpush.msra.mxu0 %v65_v0  ;;  %139 = vmatpush.msra.mxu1 %v65_v0  ;;  %v59_v6 = vld [vmem:[%s322_s3 + $0x48] sm:$0xff]  ;;  %v58_v7 = vld [vmem:[%s322_s3 + $0x40] sm:$0xff]  ;;  %v57_v8 = vld [vmem:[%s322_s3 + $0x38] sm:$0xff] }
   0x4   :  { %143 = vmatpush.msra.mxu2 %v64_v1  ;;  %144 = vmatpush.msra.mxu3 %v64_v1  ;;  %v56_v9 = vld [vmem:[%s322_s3 + $0x30] sm:$0xff]  ;;  %v188_v10 = vld [vmem:[%s323_s1] ss:$0 sm:$0xff]  ;;  %v29_v12 = vld [vmem:[%s325_s0 + $0x18] sm:$0xff] }
   0x5   :  { %67 = vmatpush.msra.mxu0 %v64_v1  ;;  %142 = vmatpush.msra.mxu1 %v64_v1  ;;  %v28_v11 = vld [vmem:[%s325_s0 + $0x10] sm:$0xff]  ;;  %v55_v13 = vld [vmem:[%s322_s3 + $0x28] sm:$0xff]  ;;  %v26_v14 = vld [vmem:[%s325_s0] sm:$0xff]  ;;  %v37_v19 = vmul.f32 %v188_v10, %v29_v12 }
   0x6   :  { %146 = vmatpush.msra.mxu2 %v63_v2  ;;  %147 = vmatpush.msra.mxu3 %v63_v2  ;;  %v27_v15 = vld [vmem:[%s325_s0 + $0x8] sm:$0xff]  ;;  %v54_v16 = vld [vmem:[%s322_s3 + $0x20] sm:$0xff]  ;;  %v36_v17 = vmul.f32 %v188_v10, %v28_v11  ;;  %v53_v20 = vld [vmem:[%s322_s3 + $0x18] sm:$0xff]  ;;  %v34_v21 = vmul.f32 %v188_v10, %v26_v14 }
   0x7   :  { %68 = vmatpush.msra.mxu0 %v63_v2  ;;  %145 = vmatpush.msra.mxu1 %v63_v2  ;;  %v189_v18 = vld [vmem:[%s324_s2] ss:$0 sm:$0xff]  ;;  %v35_v22 = vmul.f32 %v188_v10, %v27_v15  ;;  %v52_v23 = vld [vmem:[%s322_s3 + $0x10] sm:$0xff]  ;;  %v51_v26 = vld [vmem:[%s322_s3 + $0x8] sm:$0xff] }
   0x8   :  { %149 = vmatpush.msra.mxu2 %v62_v3  ;;  %150 = vmatpush.msra.mxu3 %v62_v3  ;;  %v44_v24 = vadd.f32 %v189_v18, %v36_v17  ;;  %v45_v25 = vadd.f32 %v189_v18, %v37_v19  ;;  %v42_v27 = vadd.f32 %v189_v18, %v34_v21  ;;  %v50_v29 = vld [vmem:[%s322_s3] sm:$0xff] }
   0x9   :  { %69 = vmatpush.msra.mxu0 %v62_v3  ;;  %148 = vmatpush.msra.mxu1 %v62_v3  ;;  %v43_v28 = vadd.f32 %v189_v18, %v35_v22  ;;  %v99_v58 = vld [vmem:[%s326_s5] sm:$0x1] }
   0xa   :  { %152 = vmatpush.msra.mxu2 %v61_v4  ;;  %153 = vmatpush.msra.mxu3 %v61_v4  ;;  %v48_v30 = vmax.f32 %v44_v24, 0.0  ;;  %v49_v31 = vmax.f32 %v45_v25, 0.0  ;;  %v46_v32 = vmax.f32 %v42_v27, 0.0  ;;  %v111_v61 = vld [vmem:[%s327_s6] sm:$0x1] }
   0xb   :  { %70 = vmatpush.msra.mxu0 %v61_v4  ;;  %151 = vmatpush.msra.mxu1 %v61_v4  ;;  %v47_v33 = vmax.f32 %v43_v28, 0.0 }
   0xc   :  { %155 = vmatpush.msra.mxu2 %v60_v5  ;;  %156 = vmatpush.msra.mxu3 %v60_v5 }
   0xd   :  { %71 = vmatpush.msra.mxu0 %v60_v5  ;;  %154 = vmatpush.msra.mxu1 %v60_v5 }
   0xe   :  { %158 = vmatpush.msra.mxu2 %v59_v6  ;;  %159 = vmatpush.msra.mxu3 %v59_v6 }
   0xf   :  { %72 = vmatpush.msra.mxu0 %v59_v6  ;;  %157 = vmatpush.msra.mxu1 %v59_v6 }
  0x10   :  { %161 = vmatpush.msra.mxu2 %v58_v7  ;;  %162 = vmatpush.msra.mxu3 %v58_v7 }
  0x11   :  { %73 = vmatpush.msra.mxu0 %v58_v7  ;;  %160 = vmatpush.msra.mxu1 %v58_v7 }
  0x12   :  { %164 = vmatpush.msra.mxu2 %v57_v8  ;;  %165 = vmatpush.msra.mxu3 %v57_v8 }
  0x13   :  { %74 = vmatpush.msra.mxu0 %v57_v8  ;;  %163 = vmatpush.msra.mxu1 %v57_v8 }
  0x14   :  { %167 = vmatpush.msra.mxu2 %v56_v9  ;;  %168 = vmatpush.msra.mxu3 %v56_v9 }
  0x15   :  { %75 = vmatpush.msra.mxu0 %v56_v9  ;;  %166 = vmatpush.msra.mxu1 %v56_v9 }
  0x16   :  { %170 = vmatpush.msra.mxu2 %v55_v13  ;;  %171 = vmatpush.msra.mxu3 %v55_v13 }
  0x17   :  { %76 = vmatpush.msra.mxu0 %v55_v13  ;;  %169 = vmatpush.msra.mxu1 %v55_v13 }
  0x18   :  { %173 = vmatpush.msra.mxu2 %v54_v16  ;;  %174 = vmatpush.msra.mxu3 %v54_v16 }
  0x19   :  { %77 = vmatpush.msra.mxu0 %v54_v16  ;;  %172 = vmatpush.msra.mxu1 %v54_v16 }
  0x1a   :  { %176 = vmatpush.msra.mxu2 %v53_v20  ;;  %177 = vmatpush.msra.mxu3 %v53_v20 }
  0x1b   :  { %78 = vmatpush.msra.mxu0 %v53_v20  ;;  %175 = vmatpush.msra.mxu1 %v53_v20 }
  0x1c   :  { %179 = vmatpush.msra.mxu2 %v52_v23  ;;  %180 = vmatpush.msra.mxu3 %v52_v23 }
  0x1d   :  { %79 = vmatpush.msra.mxu0 %v52_v23  ;;  %178 = vmatpush.msra.mxu1 %v52_v23 }
  0x1e   :  { %182 = vmatpush.msra.mxu2 %v51_v26  ;;  %183 = vmatpush.msra.mxu3 %v51_v26 }
  0x1f   :  { %80 = vmatpush.msra.mxu0 %v51_v26  ;;  %181 = vmatpush.msra.mxu1 %v51_v26 }
  0x20   :  { %185 = vmatpush.msra.mxu2 %v50_v29  ;;  %186 = vmatpush.msra.mxu3 %v50_v29 }
  0x21   :  { %88 = vmatmul.f32.vlgmr.msra.gmra.mxu2 %v48_v30  ;;  %91 = vmatmul.f32.vlgmr.msra.gmra.mxu3 %v49_v31 }
  0x22   :  { %81 = vmatpush.msra.mxu0 %v50_v29  ;;  %184 = vmatpush.msra.mxu1 %v50_v29 }
  0x23   :  { %82 = vmatmul.f32.vlgmr.msra.gmra.mxu0 %v46_v32  ;;  %85 = vmatmul.f32.vlgmr.msra.gmra.mxu1 %v47_v33 }
  0xa0   :  { %v83_v35 = vpop.f32.mrf.mxu0  ;;  %v86_v36 = vpop.f32.mrf.mxu1 }
  0xa1   :  { %95 = vst [vmem:[%s328_s4] sm:$0xff] %v83_v35  ;;  %v112_v37 = vmul.f32 %v83_v35, %v83_v35  ;;  %v100_v38 = vadd.f32 %v86_v36, %v83_v35  ;;  %v113_v39 = vmul.f32 %v86_v36, %v86_v36 }
  0xa2   :  { %96 = vst [vmem:[%s328_s4 + $0x8] sm:$0xff] %v86_v36 }
  0xa3   :  { %v116_v40 = vadd.f32 %v113_v39, %v112_v37 }
  0xa4   :  { %v89_v41 = vpop.f32.mrf.mxu2  ;;  %v92_v42 = vpop.f32.mrf.mxu3 }
  0xa5   :  { %97 = vst [vmem:[%s328_s4 + $0x10] sm:$0xff] %v89_v41  ;;  %v101_v43 = vadd.f32 %v100_v38, %v89_v41  ;;  %v114_v44 = vmul.f32 %v89_v41, %v89_v41  ;;  %v115_v45 = vmul.f32 %v92_v42, %v92_v42 }
  0xa6   :  { %98 = vst [vmem:[%s328_s4 + $0x18] sm:$0xff] %v92_v42 }
  0xa7   :  { %v117_v46 = vadd.f32 %v116_v40, %v114_v44  ;;  %v102_v47 = vadd.f32 %v101_v43, %v92_v42 }
  0xa9   :  { %v103_v48 = vrot.slane %v102_v47, 4  ;;  %v118_v49 = vadd.f32 %v117_v46, %v115_v45 }
  0xab   :  { %v104_v50 = vadd.f32 %v103_v48, %v102_v47  ;;  %v119_v51 = vrot.slane %v118_v49, 4 }
  0xad   :  { %v105_v52 = vrot.slane %v104_v50, 2  ;;  %v120_v53 = vadd.f32 %v119_v51, %v118_v49 }
  0xaf   :  { %v106_v54 = vadd.f32 %v105_v52, %v104_v50  ;;  %v121_v55 = vrot.slane %v120_v53, 2 }
  0xb1   :  { %v107_v56 = vrot.slane %v106_v54, 1  ;;  %v122_v57 = vadd.f32 %v121_v55, %v120_v53 }
  0xb3   :  { %v108_v59 = vadd.f32 %v107_v56, %v106_v54  ;;  %v123_v60 = vrot.slane %v122_v57, 1 }
  0xb5   :  { %v109_v62 = vadd.f32 %v108_v59, %v99_v58  ;;  %v124_v63 = vadd.f32 %v123_v60, %v122_v57 }
  0xb7   :  { %110 = vst [vmem:[%s326_s5] sm:$0x1] %v109_v62  ;;  %v125_v0 = vadd.f32 %v124_v63, %v111_v61 }
  0xb9   :  { %126 = vst [vmem:[%s327_s6] sm:$0x1] %v125_v0 }

// kernel: encoder_forward.5
= control target key start
LH: loop header
LB: loop body
LE: loop exit
PB: predicated region body
PF: predicated region fallthrough
CT: control target
= control target key end

     0   :  { %12 = vsyncpa [#allocation3], 0  ;;  %s236_s24 = smov [#allocation2]   ;;  %s237_s26 = smov 128   ;;  %s326_s0 = inlined_call_operand.vmem [shape: f32[32,128], index: 0, kind: input, shape index: {}]   ;;  %s327_s1 = inlined_call_operand.vmem [shape: f32[1,128], index: 1, kind: input, shape index: {}]   ;;  %s328_s2 = inlined_call_operand.vmem [shape: f32[1,128], index: 2, kind: input, shape index: {}]   ;;  %s329_s3 = inlined_call_operand.hbm [shape: f32[128,128], index: 3, kind: input, shape index: {}]   ;;  %s330_s4 = inlined_call_operand.vmem [shape: f32[32,128], index: 4, kind: output, shape index: {0}]   ;;  %s331_s5 = inlined_call_operand.vmem [shape: f32[1,128], index: 5, kind: output, shape index: {1}]   ;;  %s332_s6 = inlined_call_operand.vmem [shape: f32[1,128], index: 6, kind: output, shape index: {2}]  }
   0x1   :  { %s23_s23 = sshll.u32 %s329_s3, 4  ;;  %s25_s25 = sshll.u32 %s236_s24, 4  ;;  %s24_s23 = int_to_ptr.hbm [resolvable:$true] %s23_s23  ;;  %s26_s25 = int_to_ptr.vmem [resolvable:$true] %s25_s25 }
   0x2   :  { %s238_s27 = smov 8  }
   0x3   :  { %31 = dma.hbm_to_vmem [thread:$0]  %s24_s23, 2048, %s26_s25, [#allocation3], %s237_s26, %s237_s26, %s238_s27  }
   0x4   :  { %234 = dma.done.wait [#allocation3], 2048  }
   0x5   :  { %235 = vsyncadd [#allocation3], 4294965248  ;;  %v81_v0 = vld [vmem:[#allocation2 + $0x78] sm:$0xff]  ;;  %v80_v1 = vld [vmem:[#allocation2 + $0x70] sm:$0xff]  ;;  %v239_v34 = vmov 0.0  }
   0x6   :  { %157 = vmatpush.msra.mxu2 %v81_v0  ;;  %158 = vmatpush.msra.mxu3 %v81_v0  ;;  %v79_v2 = vld [vmem:[#allocation2 + $0x68] sm:$0xff]  ;;  %v78_v3 = vld [vmem:[#allocation2 + $0x60] sm:$0xff]  ;;  %v77_v4 = vld [vmem:[#allocation2 + $0x58] sm:$0xff]  ;;  %40 = vst [vmem:[%s331_s5] sm:$0x1] %v239_v34 }
   0x7   :  { %82 = vmatpush.msra.mxu0 %v81_v0  ;;  %156 = vmatpush.msra.mxu1 %v81_v0  ;;  %v76_v5 = vld [vmem:[#allocation2 + $0x50] sm:$0xff]  ;;  %v75_v6 = vld [vmem:[#allocation2 + $0x48] sm:$0xff]  ;;  %v74_v7 = vld [vmem:[#allocation2 + $0x40] sm:$0xff]  ;;  %41 = vst [vmem:[%s332_s6] sm:$0x1] %v239_v34 }
   0x8   :  { %160 = vmatpush.msra.mxu2 %v80_v1  ;;  %161 = vmatpush.msra.mxu3 %v80_v1  ;;  %v73_v8 = vld [vmem:[#allocation2 + $0x38] sm:$0xff]  ;;  %v72_v9 = vld [vmem:[#allocation2 + $0x30] sm:$0xff]  ;;  %v208_v10 = vld [vmem:[%s327_s1] ss:$0 sm:$0xff] }
   0x9   :  { %83 = vmatpush.msra.mxu0 %v80_v1  ;;  %159 = vmatpush.msra.mxu1 %v80_v1  ;;  %v44_v11 = vld [vmem:[%s326_s0 + $0x10] sm:$0xff]  ;;  %v45_v12 = vld [vmem:[%s326_s0 + $0x18] sm:$0xff]  ;;  %v71_v13 = vld [vmem:[#allocation2 + $0x28] sm:$0xff] }
   0xa   :  { %163 = vmatpush.msra.mxu2 %v79_v2  ;;  %164 = vmatpush.msra.mxu3 %v79_v2  ;;  %v42_v14 = vld [vmem:[%s326_s0] sm:$0xff]  ;;  %v43_v15 = vld [vmem:[%s326_s0 + $0x8] sm:$0xff]  ;;  %v52_v17 = vmul.f32 %v208_v10, %v44_v11  ;;  %v53_v19 = vmul.f32 %v208_v10, %v45_v12  ;;  %v69_v20 = vld [vmem:[#allocation2 + $0x18] sm:$0xff] }
   0xb   :  { %84 = vmatpush.msra.mxu0 %v79_v2  ;;  %162 = vmatpush.msra.mxu1 %v79_v2  ;;  %v70_v16 = vld [vmem:[#allocation2 + $0x20] sm:$0xff]  ;;  %v50_v21 = vmul.f32 %v208_v10, %v42_v14  ;;  %v51_v22 = vmul.f32 %v208_v10, %v43_v15  ;;  %v68_v23 = vld [vmem:[#allocation2 + $0x10] sm:$0xff]  ;;  %v67_v26 = vld [vmem:[#allocation2 + $0x8] sm:$0xff] }
   0xc   :  { %166 = vmatpush.msra.mxu2 %v78_v3  ;;  %167 = vmatpush.msra.mxu3 %v78_v3  ;;  %v209_v18 = vld [vmem:[%s328_s2] ss:$0 sm:$0xff] }
   0xd   :  { %85 = vmatpush.msra.mxu0 %v78_v3  ;;  %165 = vmatpush.msra.mxu1 %v78_v3  ;;  %v60_v24 = vadd.f32 %v209_v18, %v52_v17  ;;  %v61_v25 = vadd.f32 %v209_v18, %v53_v19  ;;  %v58_v27 = vadd.f32 %v209_v18, %v50_v21  ;;  %v66_v29 = vld [vmem:[#allocation2] sm:$0xff] }
   0xe   :  { %169 = vmatpush.msra.mxu2 %v77_v4  ;;  %170 = vmatpush.msra.mxu3 %v77_v4  ;;  %v59_v28 = vadd.f32 %v209_v18, %v51_v22  ;;  %v115_v58 = vld [vmem:[%s331_s5] sm:$0x1] }
   0xf   :  { %86 = vmatpush.msra.mxu0 %v77_v4  ;;  %168 = vmatpush.msra.mxu1 %v77_v4  ;;  %v64_v30 = vmax.f32 %v60_v24, 0.0  ;;  %v65_v31 = vmax.f32 %v61_v25, 0.0  ;;  %v62_v32 = vmax.f32 %v58_v27, 0.0  ;;  %v127_v61 = vld [vmem:[%s332_s6] sm:$0x1] }
  0x10   :  { %172 = vmatpush.msra.mxu2 %v76_v5  ;;  %173 = vmatpush.msra.mxu3 %v76_v5  ;;  %v63_v33 = vmax.f32 %v59_v28, 0.0 }
  0x11   :  { %87 = vmatpush.msra.mxu0 %v76_v5  ;;  %171 = vmatpush.msra.mxu1 %v76_v5 }
  0x12   :  { %175 = vmatpush.msra.mxu2 %v75_v6  ;;  %176 = vmatpush.msra.mxu3 %v75_v6 }
  0x13   :  { %88 = vmatpush.msra.mxu0 %v75_v6  ;;  %174 = vmatpush.msra.mxu1 %v75_v6 }
  0x14   :  { %178 = vmatpush.msra.mxu2 %v74_v7  ;;  %179 = vmatpush.msra.mxu3 %v74_v7 }
  0x15   :  { %89 = vmatpush.msra.mxu0 %v74_v7  ;;  %177 = vmatpush.msra.mxu1 %v74_v7 }
  0x16   :  { %181 = vmatpush.msra.mxu2 %v73_v8  ;;  %182 = vmatpush.msra.mxu3 %v73_v8 }
  0x17   :  { %90 = vmatpush.msra.mxu0 %v73_v8  ;;  %180 = vmatpush.msra.mxu1 %v73_v8 }
  0x18   :  { %184 = vmatpush.msra.mxu2 %v72_v9  ;;  %185 = vmatpush.msra.mxu3 %v72_v9 }
  0x19   :  { %91 = vmatpush.msra.mxu0 %v72_v9  ;;  %183 = vmatpush.msra.mxu1 %v72_v9 }
  0x1a   :  { %187 = vmatpush.msra.mxu2 %v71_v13  ;;  %188 = vmatpush.msra.mxu3 %v71_v13 }
  0x1b   :  { %92 = vmatpush.msra.mxu0 %v71_v13  ;;  %186 = vmatpush.msra.mxu1 %v71_v13 }
  0x1c   :  { %190 = vmatpush.msra.mxu2 %v70_v16  ;;  %191 = vmatpush.msra.mxu3 %v70_v16 }
  0x1d   :  { %93 = vmatpush.msra.mxu0 %v70_v16  ;;  %189 = vmatpush.msra.mxu1 %v70_v16 }
  0x1e   :  { %193 = vmatpush.msra.mxu2 %v69_v20  ;;  %194 = vmatpush.msra.mxu3 %v69_v20 }
  0x1f   :  { %94 = vmatpush.msra.mxu0 %v69_v20  ;;  %192 = vmatpush.msra.mxu1 %v69_v20 }
  0x20   :  { %196 = vmatpush.msra.mxu2 %v68_v23  ;;  %197 = vmatpush.msra.mxu3 %v68_v23 }
  0x21   :  { %95 = vmatpush.msra.mxu0 %v68_v23  ;;  %195 = vmatpush.msra.mxu1 %v68_v23 }
  0x22   :  { %199 = vmatpush.msra.mxu2 %v67_v26  ;;  %200 = vmatpush.msra.mxu3 %v67_v26 }
  0x23   :  { %96 = vmatpush.msra.mxu0 %v67_v26  ;;  %198 = vmatpush.msra.mxu1 %v67_v26 }
  0x24   :  { %202 = vmatpush.msra.mxu2 %v66_v29  ;;  %203 = vmatpush.msra.mxu3 %v66_v29 }
  0x25   :  { %104 = vmatmul.f32.vlgmr.msra.gmra.mxu2 %v64_v30  ;;  %107 = vmatmul.f32.vlgmr.msra.gmra.mxu3 %v65_v31 }
  0x26   :  { %97 = vmatpush.msra.mxu0 %v66_v29  ;;  %201 = vmatpush.msra.mxu1 %v66_v29 }
  0x27   :  { %98 = vmatmul.f32.vlgmr.msra.gmra.mxu0 %v62_v32  ;;  %101 = vmatmul.f32.vlgmr.msra.gmra.mxu1 %v63_v33 }
  0xa4   :  { %v99_v35 = vpop.f32.mrf.mxu0  ;;  %v102_v36 = vpop.f32.mrf.mxu1 }
  0xa5   :  { %111 = vst [vmem:[%s330_s4] sm:$0xff] %v99_v35  ;;  %v128_v37 = vmul.f32 %v99_v35, %v99_v35  ;;  %v116_v38 = vadd.f32 %v102_v36, %v99_v35  ;;  %v129_v39 = vmul.f32 %v102_v36, %v102_v36 }
  0xa6   :  { %112 = vst [vmem:[%s330_s4 + $0x8] sm:$0xff] %v102_v36 }
  0xa7   :  { %v132_v40 = vadd.f32 %v129_v39, %v128_v37 }
  0xa8   :  { %v105_v41 = vpop.f32.mrf.mxu2  ;;  %v108_v42 = vpop.f32.mrf.mxu3 }
  0xa9   :  { %113 = vst [vmem:[%s330_s4 + $0x10] sm:$0xff] %v105_v41  ;;  %v117_v43 = vadd.f32 %v116_v38, %v105_v41  ;;  %v130_v44 = vmul.f32 %v105_v41, %v105_v41  ;;  %v131_v45 = vmul.f32 %v108_v42, %v108_v42 }
  0xaa   :  { %114 = vst [vmem:[%s330_s4 + $0x18] sm:$0xff] %v108_v42 }
  0xab   :  { %v133_v46 = vadd.f32 %v132_v40, %v130_v44  ;;  %v118_v47 = vadd.f32 %v117_v43, %v108_v42 }
  0xad   :  { %v119_v48 = vrot.slane %v118_v47, 4  ;;  %v134_v49 = vadd.f32 %v133_v46, %v131_v45 }
  0xaf   :  { %v120_v50 = vadd.f32 %v119_v48, %v118_v47  ;;  %v135_v51 = vrot.slane %v134_v49, 4 }
  0xb1   :  { %v121_v52 = vrot.slane %v120_v50, 2  ;;  %v136_v53 = vadd.f32 %v135_v51, %v134_v49 }
  0xb3   :  { %v122_v54 = vadd.f32 %v121_v52, %v120_v50  ;;  %v137_v55 = vrot.slane %v136_v53, 2 }
  0xb5   :  { %v123_v56 = vrot.slane %v122_v54, 1  ;;  %v138_v57 = vadd.f32 %v137_v55, %v136_v53 }
  0xb7   :  { %v124_v59 = vadd.f32 %v123_v56, %v122_v54  ;;  %v139_v60 = vrot.slane %v138_v57, 1 }
  0xb9   :  { %v125_v62 = vadd.f32 %v124_v59, %v115_v58  ;;  %v140_v63 = vadd.f32 %v139_v60, %v138_v57 }
  0xbb   :  { %126 = vst [vmem:[%s331_s5] sm:$0x1] %v125_v62  ;;  %v141_v0 = vadd.f32 %v140_v63, %v127_v61 }
  0xbd   :  { %142 = vst [vmem:[%s332_s6] sm:$0x1] %v141_v0 }
  0xbe   :  { %155 = vsyncpa [#allocation3], 1 }

// kernel: encoder_forward.4
= control target key start
LH: loop header
LB: loop body
LE: loop exit
PB: predicated region body
PF: predicated region fallthrough
CT: control target
= control target key end

     0   :  { %vm38_vm0 = vcmask 1043456   ;;  %vm25_vm1 = vcmask 31744   ;;  %v124_v5 = vmov 0.0   ;;  %s195_s1 = inlined_call_operand.vmem [shape: f32[4,128], index: 1, kind: input, shape index: {}]   ;;  %s196_s0 = inlined_call_operand.vmem [shape: f32[32,4], index: 0, kind: input, shape index: {}]   ;;  %s197_s3 = inlined_call_operand.vmem [shape: f32[1,128], index: 3, kind: output, shape index: {1}]   ;;  %s198_s4 = inlined_call_operand.vmem [shape: f32[1,128], index: 4, kind: output, shape index: {2}]   ;;  %s199_s2 = inlined_call_operand.vmem [shape: f32[32,128], index: 2, kind: output, shape index: {0}]  }
   0x1   :  { %v24_v0 = vld [vmem:[%s195_s1] sm:$0xf]  ;;  %v22_v1 = vld [vmem:[%s196_s0 + $0x10] sm:$0xff]  ;;  %v23_v2 = vld [vmem:[%s196_s0 + $0x18] sm:$0xff]  ;;  %18 = vst [vmem:[%s197_s3] sm:$0x1] %v124_v5 }
   0x2   :  { %121 = vmatpush.msk.msra.mxu2 %vm38_vm0, %v24_v0  ;;  %122 = vmatpush.msk.msra.mxu3 %vm38_vm0, %v24_v0  ;;  %v20_v3 = vld [vmem:[%s196_s0] sm:$0xff]  ;;  %v21_v4 = vld [vmem:[%s196_s0 + $0x8] sm:$0xff]  ;;  %19 = vst [vmem:[%s198_s4] sm:$0x1] %v124_v5 }
   0x3   :  { %118 = vmatmul.msk.f32.vlgmr.msra.gmra.mxu2 %vm25_vm1, %v22_v1  ;;  %119 = vmatmul.msk.f32.vlgmr.msra.gmra.mxu3 %vm25_vm1, %v23_v2 }
   0x4   :  { %115 = vmatpush.msk.msra.mxu0 %vm38_vm0, %v24_v0  ;;  %120 = vmatpush.msk.msra.mxu1 %vm38_vm0, %v24_v0 }
   0x5   :  { %116 = vmatmul.msk.f32.vlgmr.msra.gmra.mxu0 %vm25_vm1, %v20_v3  ;;  %117 = vmatmul.msk.f32.vlgmr.msra.gmra.mxu1 %vm25_vm1, %v21_v4 }
   0x8   :  { %v75_v29 = vld [vmem:[%s197_s3] sm:$0x1] }
   0x9   :  { %v87_v32 = vld [vmem:[%s198_s4] sm:$0x1] }
  0x82   :  { %v59_v6 = vpop.f32.mrf.mxu0  ;;  %v62_v7 = vpop.f32.mrf.mxu1 }
  0x83   :  { %71 = vst [vmem:[%s199_s2] sm:$0xff] %v59_v6  ;;  %v88_v8 = vmul.f32 %v59_v6, %v59_v6  ;;  %v76_v9 = vadd.f32 %v62_v7, %v59_v6  ;;  %v89_v10 = vmul.f32 %v62_v7, %v62_v7 }
  0x84   :  { %72 = vst [vmem:[%s199_s2 + $0x8] sm:$0xff] %v62_v7 }
  0x85   :  { %v92_v11 = vadd.f32 %v89_v10, %v88_v8 }
  0x86   :  { %v65_v12 = vpop.f32.mrf.mxu2  ;;  %v68_v13 = vpop.f32.mrf.mxu3 }
  0x87   :  { %73 = vst [vmem:[%s199_s2 + $0x10] sm:$0xff] %v65_v12  ;;  %v77_v14 = vadd.f32 %v76_v9, %v65_v12  ;;  %v90_v15 = vmul.f32 %v65_v12, %v65_v12  ;;  %v91_v16 = vmul.f32 %v68_v13, %v68_v13 }
  0x88   :  { %74 = vst [vmem:[%s199_s2 + $0x18] sm:$0xff] %v68_v13 }
  0x89   :  { %v93_v17 = vadd.f32 %v92_v11, %v90_v15  ;;  %v78_v18 = vadd.f32 %v77_v14, %v68_v13 }
  0x8b   :  { %v79_v19 = vrot.slane %v78_v18, 4  ;;  %v94_v20 = vadd.f32 %v93_v17, %v91_v16 }
  0x8d   :  { %v80_v21 = vadd.f32 %v79_v19, %v78_v18  ;;  %v95_v22 = vrot.slane %v94_v20, 4 }
  0x8f   :  { %v81_v23 = vrot.slane %v80_v21, 2  ;;  %v96_v24 = vadd.f32 %v95_v22, %v94_v20 }
  0x91   :  { %v82_v25 = vadd.f32 %v81_v23, %v80_v21  ;;  %v97_v26 = vrot.slane %v96_v24, 2 }
  0x93   :  { %v83_v27 = vrot.slane %v82_v25, 1  ;;  %v98_v28 = vadd.f32 %v97_v26, %v96_v24 }
  0x95   :  { %v84_v30 = vadd.f32 %v83_v27, %v82_v25  ;;  %v99_v31 = vrot.slane %v98_v28, 1 }
  0x97   :  { %v85_v33 = vadd.f32 %v84_v30, %v75_v29  ;;  %v100_v34 = vadd.f32 %v99_v31, %v98_v28 }
  0x99   :  { %86 = vst [vmem:[%s197_s3] sm:$0x1] %v85_v33  ;;  %v101_v35 = vadd.f32 %v100_v34, %v87_v32 }
  0x9b   :  { %102 = vst [vmem:[%s198_s4] sm:$0x1] %v101_v35 }

// kernel: encoder_forward.7
= control target key start
LH: loop header
LB: loop body
LE: loop exit
PB: predicated region body
PF: predicated region fallthrough
CT: control target
= control target key end

     0   :  { %8 = vsyncpa [#allocation3], 0  ;;  %s325_s12 = smov 0   ;;  %s349_s0 = inlined_call_operand.vmem [shape: f32[32,128], index: 0, kind: input, shape index: {}]   ;;  %s350_s1 = inlined_call_operand.vmem [shape: f32[1,128], index: 1, kind: input, shape index: {}]   ;;  %s351_s2 = inlined_call_operand.vmem [shape: f32[1,128], index: 2, kind: input, shape index: {}]   ;;  %s352_s3 = inlined_call_operand.hbm [shape: f32[2,128], index: 3, kind: output, shape index: {}]  }
   0x1 LB: > { %s233_s13 = sadd.s32 4294967295, %s302_s12   ;;  %p236_p0 = scmp.ge.s32.totalorder %s302_s12, 1  ;;  %s302_s12 = sphi %s325_s12, %s14_s12  }
   0x2   : > { %p134_p1 = scmp.lt.s32.totalorder %s302_s12, 3 }
   0x4   : > { %p135_p2 = pnand %p236_p0, %p134_p1 }
   0x5   : > { %s237_s14 = sshll.u32 (!%p135_p2), %s233_s13, 1  ;;  %s304_s23 = smov (!%p135_p2), [#allocation2]  }
   0x6   : > { %138 = sbr.rel (%p135_p2) target bundleno = 39 (0x27), region = 32  ;;  %p154_p3 = scmp.lt.s32.totalorder (!%p135_p2), %s237_s14, 3 }
   0x7   : > { %s190_s24 = sshll.u32 (!%p135_p2), %s304_s23, 4  ;;  %s192_s27 = sshll.u32 (!%p135_p2), %s352_s3, 4  ;;  %s191_s24 = int_to_ptr.vmem [resolvable:$true] %s190_s24  ;;  %s193_s27 = int_to_ptr.hbm [resolvable:$true] %s192_s27 }
   0x8   : > { %p251_p4 = scmp.eq.s32.totalorder (!%p135_p2), %s233_s13, 1  ;;  %s244_s28 = scalar_lea.vmem (!%p135_p2), [#allocation2], %s302_s12 }
   0xb   : > { %s354_s14 = smov (!%p154_p3, %s237_s14), 3  ;;  %v262_v0 = vld [vmem:[%s350_s1] ss:$0 sm:$0xff] }
   0xc   : > { %s238_s17 = sshll.u32 %s354_s14, 3  ;;  %v263_v1 = vld [vmem:[%s351_s2] ss:$0 sm:$0xff] }
   0xd   : > { %s157_s20 = scalar_lea.vmem %s349_s0, %s238_s17 }
   0xe   : > { %v159_v2 = vld [vmem:[%s157_s20] sm:$0xff]  ;;  %v160_v3 = vld [vmem:[%s157_s20 + $0x8] sm:$0xff] }
   0xf   : > { %v165_v4 = vmul.f32 %v262_v0, %v159_v2  ;;  %v166_v5 = vmul.f32 %v262_v0, %v160_v3 }
  0x11   : > { %v171_v6 = vadd.f32 %v263_v1, %v165_v4  ;;  %v172_v7 = vadd.f32 %v263_v1, %v166_v5 }
  0x13   : > { %v173_v8 = vmax.f32 %v171_v6, 0.0  ;;  %v174_v9 = vmax.f32 %v172_v7, 0.0 }
  0x15   : > { %v175_v10 = vmax.f32 %v173_v8, %v174_v9 }
  0x17   : > { %v176_v11 = vrot.slane %v175_v10, 4 }
  0x19   : > { %v177_v12 = vmax.f32 %v175_v10, %v176_v11 }
  0x1b   : > { %v178_v13 = vrot.slane %v177_v12, 2 }
  0x1d   : > { %v179_v14 = vmax.f32 %v177_v12, %v178_v13 }
  0x1f   : > { %v180_v15 = vrot.slane %v179_v14, 1 }
  0x21   : > { %v181_v16 = vmax.f32 %v179_v14, %v180_v15 }
  0x23   : > { %246 = vst [vmem:[%s244_s28 - $0x1] sm:$0x1] %v181_v16 }
  0x24   : > { %248 = dma.vmem_to_hbm [thread:$0]  (%p251_p4), %s191_s24, 32, %s193_s27, [#allocation3]  }
  0x25   : > { %297 = dma.done.wait (%p251_p4), [#allocation3], 32  }
  0x26   : > { %299 = vsyncadd (%p251_p4), [#allocation3], 4294967264 }
  0x27 PF: > { %s14_s12 = sadd.s32 1, %s302_s12  }
  0x28   : > { %p11_p5 = scmp.ge.s32.totalorder %s14_s12, 4  }
  0x2a   :  { %13 = sbr.rel (!%p11_p5) target bundleno = 1 (0x1), region = 60 }
  0x2f   :  { %206 = vsyncpa [#allocation3], 1 }
  0x30   :  { %208 = vsyncpa [#allocation3 + $0x1], 1 }

</bundles_post_ra>
